<compile_context>
chip_gen: v7x
topology: tpu7x:2x2x1
jax: 0.10.0
libtpu: 0.0.40
codegen_flags: <defaults>
</compile_context>

<pallas_src>
import jax
import jax.numpy as jnp
from jax.experimental import pallas as pl
from jax.experimental.pallas import tpu as pltpu


def _fold_params(params, eps):
    """Fold inference-mode BatchNorms into the conv weights / biases."""
    sg = params["bn_wg_gamma"] / jnp.sqrt(params["bn_wg_var"] + eps)
    bg = params["bn_wg_beta"] - params["bn_wg_mean"] * sg
    so = params["bn_out_gamma"] / jnp.sqrt(params["bn_out_var"] + eps)
    wg_f = params["wg"] * sg[:, None]                               # (C, C)
    wo_f = params["wo"] * so[:, None]                               # (P, C)
    bo_f = so * params["bo"] + params["bn_out_beta"] - params["bn_out_mean"] * so
    return wg_f, bg, wo_f, bo_f


# ---------------------------------------------------------------------------
# Path 1: fused single-N-block kernel (batch collapsed into the lane axis).
# ---------------------------------------------------------------------------
def _make_fused_kernel(n, batch_tile, c):
    def kernel(x_ref, wkvq_ref, bkvq_ref, wg_ref, bg_ref, wo_ref, bo_ref,
               o_ref, av2_ref):
        f32 = jnp.float32
        cdt = wkvq_ref.dtype
        xb = x_ref[...]                           # (P, BT*N), native dtype (f32)
        xc = xb.astype(cdt)                       # matmul operand only
        # One fused k/v/q projection over the full batch_tile*N lane face.
        kvq = (jnp.dot(wkvq_ref[...], xc, preferred_element_type=f32)
               + bkvq_ref[...])                   # (3C, BT*N) f32
        k = kvq[:c]
        v = kvq[c:2 * c]
        q = kvq[2 * c:]
        # Per-batch gram / softmax / AV2 (tiny (C, C) work), written to a VMEM
        # scratch so conv_wg / out run once over the whole lane face.
        for b in range(batch_tile):               # static, small trip count
            sl = slice(b * n, (b + 1) * n)
            # avt[j, i] = sum_n v[j, n] q[i, n] == AV[i, j]; PyTorch's
            # Softmax(dim=2) of AV == softmax over axis 0 of avt.  Logits f32.
            avt = jax.lax.dot_general(v[:, sl], q[:, sl],
                                      (((1,), (1,)), ((), ())),
                                      preferred_element_type=f32)   # (C, C)
            avt = avt - jnp.max(avt, axis=0, keepdims=True)
            avt = jnp.exp(avt)
            avt = avt / jnp.sum(avt, axis=0, keepdims=True)
            av2 = jnp.dot(avt.astype(cdt), k[:, sl].astype(cdt),
                          preferred_element_type=f32)               # (C, N)
            av2_ref[:, sl] = av2.astype(av2_ref.dtype)
        # conv_wg (+ folded BN1d) and out conv (+ folded BN2d), compute-dtype
        # operands / f32 accumulation; residual uses the full-precision x.
        y = (jnp.dot(wg_ref[...], av2_ref[...], preferred_element_type=f32)
             + bg_ref[...])                                         # (C, BT*N)
        z = (jnp.dot(wo_ref[...], y.astype(cdt), preferred_element_type=f32)
             + bo_ref[...])                                         # (P, BT*N)
        o_ref[...] = jnp.maximum(z + xb.astype(f32), 0.0).astype(o_ref.dtype)

    return kernel


def _spatial_gcn_fused(x_nchw, params, eps, compute_dtype, batch_tile,
                       vmem_limit_bytes):
    b, p, h, w = x_nchw.shape
    c = p // 2
    n = h * w
    f32 = jnp.float32
    assert b % batch_tile == 0

    wg_f, bg, wo_f, bo_f = _fold_params(params, eps)
    w_kvq = jnp.concatenate([params["wk"], params["wv"], params["wq"]], axis=0)
    b_kvq = jnp.concatenate([params["bk"], params["bv"], params["bq"]], axis=0)

    # Channel-major slab (P, B*N); the only wrapper-side data movement is one
    # transpose each way — no dtype-cast pass over x.
    x_flat = x_nchw.reshape(b, p, n).transpose(1, 0, 2).reshape(p, b * n)

    args = [
        x_flat,
        w_kvq.astype(compute_dtype), b_kvq.reshape(3 * c, 1).astype(f32),
        wg_f.astype(compute_dtype), bg.reshape(c, 1).astype(f32),
        wo_f.astype(compute_dtype), bo_f.reshape(p, 1).astype(f32),
    ]

    def rep(shape):
        nd = len(shape)
        return pl.BlockSpec(shape, lambda i, _nd=nd: (0,) * _nd)

    in_specs = [pl.BlockSpec((p, batch_tile * n), lambda i: (0, i))]
    in_specs += [rep(a.shape) for a in args[1:]]

    out_flat = pl.pallas_call(
        _make_fused_kernel(n=n, batch_tile=batch_tile, c=c),
        out_shape=jax.ShapeDtypeStruct((p, b * n), x_nchw.dtype),
        grid=(b // batch_tile,),
        in_specs=in_specs,
        out_specs=pl.BlockSpec((p, batch_tile * n), lambda i: (0, i)),
        scratch_shapes=[pltpu.VMEM((c, batch_tile * n), compute_dtype)],
        compiler_params=pltpu.CompilerParams(
            dimension_semantics=("parallel",),
            vmem_limit_bytes=vmem_limit_bytes),
    )(*args)

    return out_flat.reshape(p, b, n).transpose(1, 0, 2).reshape(b, p, h, w)


# ---------------------------------------------------------------------------
# Path 2: N-tiled two-pass path for large H*W working sets.
# ---------------------------------------------------------------------------
def _gram_kernel(x_ref, wqv_ref, bqv_ref, avt_ref, acc_ref):
    f32 = jnp.float32
    cdt = wqv_ref.dtype
    c = acc_ref.shape[0]
    ni = pl.program_id(1)

    @pl.when(ni == 0)
    def _():
        acc_ref[...] = jnp.zeros_like(acc_ref)

    xb = x_ref[0]                                                   # (P, TN)
    qv = (jnp.dot(wqv_ref[...], xb.astype(cdt), preferred_element_type=f32)
          + bqv_ref[...])                                           # (2C, TN)
    q = qv[:c]
    v = qv[c:]
    acc_ref[...] += jax.lax.dot_general(v, q, (((1,), (1,)), ((), ())),
                                        preferred_element_type=f32)

    @pl.when(ni == pl.num_programs(1) - 1)
    def _():
        a = acc_ref[...]
        a = a - jnp.max(a, axis=0, keepdims=True)
        a = jnp.exp(a)
        a = a / jnp.sum(a, axis=0, keepdims=True)
        avt_ref[0] = a.astype(avt_ref.dtype)


def _apply_kernel(avt_ref, x_ref, wk_ref, bk_ref, wg_ref, bg_ref,
                  wo_ref, bo_ref, o_ref):
    f32 = jnp.float32
    cdt = wk_ref.dtype
    xb = x_ref[0]                                                   # (P, TN)
    k = (jnp.dot(wk_ref[...], xb.astype(cdt), preferred_element_type=f32)
         + bk_ref[...])                                             # (C, TN)
    avt = avt_ref[0].astype(cdt)                                    # (C, C)
    av2 = jnp.dot(avt, k.astype(cdt), preferred_element_type=f32)   # (C, TN)
    y = (jnp.dot(wg_ref[...], av2.astype(cdt), preferred_element_type=f32)
         + bg_ref[...])
    z = (jnp.dot(wo_ref[...], y.astype(cdt), preferred_element_type=f32)
         + bo_ref[...])
    o_ref[0] = jnp.maximum(z + xb.astype(f32), 0.0).astype(o_ref.dtype)


def _spatial_gcn_ntiled(x_nchw, params, eps, compute_dtype, n_tile,
                        vmem_limit_bytes):
    b, p, h, w = x_nchw.shape
    c = p // 2
    n = h * w
    f32 = jnp.float32
    assert n % n_tile == 0
    nt = n // n_tile

    wg_f, bg, wo_f, bo_f = _fold_params(params, eps)
    w_qv = jnp.concatenate([params["wq"], params["wv"]], axis=0)    # (2C, P)
    b_qv = jnp.concatenate([params["bq"], params["bv"]], axis=0)
    x3 = x_nchw.reshape(b, p, n)

    # Pass 1: accumulate the per-batch (C, C) gram over N tiles; softmax at the
    # last tile (output block resident across the "arbitrary" n axis).
    avt = pl.pallas_call(
        _gram_kernel,
        out_shape=jax.ShapeDtypeStruct((b, c, c), f32),
        grid=(b, nt),
        in_specs=[
            pl.BlockSpec((1, p, n_tile), lambda bi, ni: (bi, 0, ni)),
            pl.BlockSpec((2 * c, p), lambda bi, ni: (0, 0)),
            pl.BlockSpec((2 * c, 1), lambda bi, ni: (0, 0)),
        ],
        out_specs=pl.BlockSpec((1, c, c), lambda bi, ni: (bi, 0, 0)),
        scratch_shapes=[pltpu.VMEM((c, c), f32)],
        compiler_params=pltpu.CompilerParams(
            dimension_semantics=("parallel", "arbitrary"),
            vmem_limit_bytes=vmem_limit_bytes),
    )(x3, w_qv.astype(compute_dtype), b_qv.reshape(2 * c, 1).astype(f32))

    # Pass 2: per-tile k projection, AV2 = avt @ k, conv_wg, out conv, ReLU.
    out3 = pl.pallas_call(
        _apply_kernel,
        out_shape=jax.ShapeDtypeStruct((b, p, n), x_nchw.dtype),
        grid=(b, nt),
        in_specs=[
            pl.BlockSpec((1, c, c), lambda bi, ni: (bi, 0, 0)),
            pl.BlockSpec((1, p, n_tile), lambda bi, ni: (bi, 0, ni)),
            pl.BlockSpec((c, p), lambda bi, ni: (0, 0)),
            pl.BlockSpec((c, 1), lambda bi, ni: (0, 0)),
            pl.BlockSpec((c, c), lambda bi, ni: (0, 0)),
            pl.BlockSpec((c, 1), lambda bi, ni: (0, 0)),
            pl.BlockSpec((p, c), lambda bi, ni: (0, 0)),
            pl.BlockSpec((p, 1), lambda bi, ni: (0, 0)),
        ],
        out_specs=pl.BlockSpec((1, p, n_tile), lambda bi, ni: (bi, 0, ni)),
        compiler_params=pltpu.CompilerParams(
            dimension_semantics=("parallel", "parallel"),
            vmem_limit_bytes=vmem_limit_bytes),
    )(avt, x3,
      params["wk"].astype(compute_dtype), params["bk"].reshape(c, 1).astype(f32),
      wg_f.astype(compute_dtype), bg.reshape(c, 1).astype(f32),
      wo_f.astype(compute_dtype), bo_f.reshape(p, 1).astype(f32))

    return out3.reshape(b, p, h, w)


# ---------------------------------------------------------------------------
# Dispatcher.
# ---------------------------------------------------------------------------
def spatial_gcn(x_nchw, params, eps=1e-5, compute_dtype=jnp.bfloat16,
                batch_tile=None, n_tile=None,
                vmem_budget_bytes=16 * 1024 * 1024):
    """SpatialGCN forward (inference-mode BN folded into the conv weights)."""
    b, p, h, w = x_nchw.shape
    c = p // 2
    n = h * w
    in_isz = jnp.dtype(x_nchw.dtype).itemsize
    out_isz = in_isz
    cd_isz = jnp.dtype(compute_dtype).itemsize

    # Per-grid-step working-set model for the fused path: double-buffered x/out
    # blocks + double-buffered replicated weight blocks + live intermediates.
    fixed = (2 * (3 * c * p + c * c + p * c) * cd_isz
             + 2 * (3 * c + c + p) * 4 + (1 << 14))
    per_b = n * (2 * p * (in_isz + out_isz)      # x / out blocks (x2 buffers)
                 + p * cd_isz                    # x cast to compute dtype
                 + 3 * c * 4                     # fused kvq (f32)
                 + c * cd_isz                    # AV2 scratch
                 + c * (4 + cd_isz)              # y (f32) + y cast
                 + p * 4)                        # z (f32)

    def vmem_limit(nbytes):
        # 48 MiB cap keeps headroom on v7x (64 MiB physical); >=32 MiB lifts the
        # 16/32 MiB scoped defaults on v5e/v6e.
        return int(min(48 << 20, max(32 << 20, 2 * nbytes)))

    if n_tile is not None:
        return _spatial_gcn_ntiled(x_nchw, params, eps, compute_dtype, n_tile,
                                   vmem_limit(fixed + per_b * n_tile // max(n, 1)))

    if batch_tile is None:
        fitting = [d for d in range(1, b + 1)
                   if b % d == 0
                   and ((d * n) % 128 == 0 or d == b)
                   and fixed + d * per_b <= vmem_budget_bytes]
        if not fitting:
            # Even one batch row does not fit: fall back to the N-tiled path.
            tile = 128 if n % 128 == 0 else n
            for t in range(n - (n % 128), 127, -128):
                if t > 0 and n % t == 0 and fixed + per_b * t // n <= vmem_budget_bytes:
                    tile = t
                    break
            return _spatial_gcn_ntiled(x_nchw, params, eps, compute_dtype, tile,
                                       vmem_limit(fixed + per_b * tile // n))
        batch_tile = max(fitting)
        # Prefer >=2 grid steps so v7x's two TensorCores both get work; extra
        # steps cost only ~0.35us each on single-TC v5e/v6e.
        if batch_tile == b and b > 1:
            smaller = [d for d in fitting if d < b]
            if smaller:
                batch_tile = max(smaller)
    assert b % batch_tile == 0, "batch_tile must divide batch"

    return _spatial_gcn_fused(x_nchw, params, eps, compute_dtype, batch_tile,
                              vmem_limit(fixed + batch_tile * per_b))


# ---------------------------------------------------------------------------
# References.
# ---------------------------------------------------------------------------
def spatial_gcn_reference(x_nchw, params, eps=1e-5):
    """Pure-JAX, full-f32 mirror of the PyTorch forward (inference-mode BN)."""
    b, p, h, w = x_nchw.shape
    n = h * w
    x = x_nchw.reshape(b, p, n)

    def conv1x1(w_, b_, inp):
        y = jnp.einsum("oc,bcn->bon", w_, inp)
        return y + b_[None, :, None] if b_ is not None else y

    node_k = conv1x1(params["wk"], params["bk"], x)
    node_v = conv1x1(params["wv"], params["bv"], x)
    node_q = conv1x1(params["wq"], params["bq"], x)

    node_k = jnp.transpose(node_k, (0, 2, 1))                      # (B, N, C)
    node_v = jnp.transpose(node_v, (0, 2, 1))                      # (B, N, C)
    av = jnp.einsum("bcn,bnd->bcd", node_q, node_v)                # (B, C, C)
    av = jax.nn.softmax(av, axis=2)
    av = jnp.einsum("bnc,bcd->bnd", node_k, av)                    # (B, N, C)
    av = jnp.transpose(av, (0, 2, 1))                              # (B, C, N)

    avw = conv1x1(params["wg"], None, av)
    sg = params["bn_wg_gamma"] / jnp.sqrt(params["bn_wg_var"] + eps)
    avw = (avw - params["bn_wg_mean"][None, :, None]) * sg[None, :, None] \
          + params["bn_wg_beta"][None, :, None]

    out = conv1x1(params["wo"], params["bo"], avw)
    so = params["bn_out_gamma"] / jnp.sqrt(params["bn_out_var"] + eps)
    out = (out - params["bn_out_mean"][None, :, None]) * so[None, :, None] \
          + params["bn_out_beta"][None, :, None]
    out = jnp.maximum(out + x, 0.0)
    return out.reshape(b, p, h, w)


def spatial_gcn_matched_reference(x_nchw, params, eps=1e-5,
                                  compute_dtype=jnp.bfloat16):
    """Mirror of the kernels' exact dtype policy (folded BN, compute_dtype matmul
    operands, f32 accumulation / softmax / bias / residual)."""
    b, p, h, w = x_nchw.shape
    n = h * w
    f32 = jnp.float32
    x = x_nchw.reshape(b, p, n).astype(f32)
    xc = x.astype(compute_dtype)
    wg_f, bg, wo_f, bo_f = _fold_params(params, eps)

    def proj(wname, bname):
        y = jnp.einsum("cp,bpn->bcn", params[wname].astype(compute_dtype), xc,
                       preferred_element_type=f32)
        return y + params[bname][None, :, None]

    k = proj("wk", "bk")
    v = proj("wv", "bv")
    q = proj("wq", "bq")

    av = jnp.einsum("bin,bjn->bij", q, v, preferred_element_type=f32)   # AV[i,j]
    av = jax.nn.softmax(av, axis=-1)
    av2 = jnp.einsum("bij,bin->bjn", av.astype(compute_dtype),
                     k.astype(compute_dtype), preferred_element_type=f32)
    y = jnp.einsum("oc,bcn->bon", wg_f.astype(compute_dtype),
                   av2.astype(compute_dtype),
                   preferred_element_type=f32) + bg[None, :, None]
    z = jnp.einsum("pc,bcn->bpn", wo_f.astype(compute_dtype),
                   y.astype(compute_dtype),
                   preferred_element_type=f32) + bo_f[None, :, None]
    out = jnp.maximum(z + x, 0.0)
    return out.reshape(b, p, h, w).astype(x_nchw.dtype)


if __name__ == "__main__":
    B, P, H, W = 2, 8, 16, 16
    C = P // 2
    key = jax.random.PRNGKey(0)
    ks = jax.random.split(key, 20)

    x = jax.random.normal(ks[0], (B, P, H, W), jnp.float32)
    params = dict(
        wk=0.2 * jax.random.normal(ks[1], (C, P), jnp.float32),
        bk=0.1 * jax.random.normal(ks[2], (C,), jnp.float32),
        wv=0.2 * jax.random.normal(ks[3], (C, P), jnp.float32),
        bv=0.1 * jax.random.normal(ks[4], (C,), jnp.float32),
        wq=0.2 * jax.random.normal(ks[5], (C, P), jnp.float32),
        bq=0.1 * jax.random.normal(ks[6], (C,), jnp.float32),
        wg=0.2 * jax.random.normal(ks[7], (C, C), jnp.float32),
        bn_wg_gamma=1.0 + 0.1 * jax.random.normal(ks[8], (C,), jnp.float32),
        bn_wg_beta=0.1 * jax.random.normal(ks[9], (C,), jnp.float32),
        bn_wg_mean=0.1 * jax.random.normal(ks[10], (C,), jnp.float32),
        bn_wg_var=0.5 + jax.random.uniform(ks[11], (C,), jnp.float32),
        wo=0.2 * jax.random.normal(ks[12], (P, C), jnp.float32),
        bo=0.1 * jax.random.normal(ks[13], (P,), jnp.float32),
        bn_out_gamma=1.0 + 0.1 * jax.random.normal(ks[14], (P,), jnp.float32),
        bn_out_beta=0.1 * jax.random.normal(ks[15], (P,), jnp.float32),
        bn_out_mean=0.1 * jax.random.normal(ks[16], (P,), jnp.float32),
        bn_out_var=0.5 + jax.random.uniform(ks[17], (P,), jnp.float32),
    )

    ref_f32 = spatial_gcn_reference(x, params)
    ref_bf16 = spatial_gcn_matched_reference(x, params, compute_dtype=jnp.bfloat16)

    # Fused path, f32: tight check vs PyTorch-semantics reference.
    out_f32 = spatial_gcn(x, params, compute_dtype=jnp.float32)
    jax.block_until_ready(out_f32)
    assert out_f32.shape == (B, P, H, W)
    assert jnp.allclose(out_f32, ref_f32, atol=2e-4, rtol=2e-4), \
        "f32 fused kernel mismatch vs reference"

    # Fused path, bf16 (perf default): check vs dtype-matched reference.
    out_bf16 = spatial_gcn(x, params, compute_dtype=jnp.bfloat16)
    jax.block_until_ready(out_bf16)
    assert jnp.allclose(out_bf16, ref_bf16, atol=2e-3, rtol=2e-3), \
        "bf16 fused kernel mismatch vs dtype-matched reference"

    # N-tiled two-pass path (forced), f32 and bf16.
    out_t_f32 = spatial_gcn(x, params, compute_dtype=jnp.float32, n_tile=128)
    jax.block_until_ready(out_t_f32)
    assert jnp.allclose(out_t_f32, ref_f32, atol=2e-4, rtol=2e-4), \
        "f32 N-tiled kernel mismatch vs reference"

    out_t_bf16 = spatial_gcn(x, params, compute_dtype=jnp.bfloat16, n_tile=128)
    jax.block_until_ready(out_t_bf16)
    assert jnp.allclose(out_t_bf16, ref_bf16, atol=2e-3, rtol=2e-3), \
        "bf16 N-tiled kernel mismatch vs dtype-matched reference"

    print("KERNEL_OK")
</pallas_src>

<mosaic_0001>
module attributes {stable_mosaic.version = 11 : i64} {
  func.func @kernel(%arg0: i32, %arg1: memref<8x256xf32, #tpu.memory_space<vmem>>, %arg2: memref<12x8xf32, #tpu.memory_space<vmem>>, %arg3: memref<12x1xf32, #tpu.memory_space<vmem>>, %arg4: memref<4x4xf32, #tpu.memory_space<vmem>>, %arg5: memref<4x1xf32, #tpu.memory_space<vmem>>, %arg6: memref<8x4xf32, #tpu.memory_space<vmem>>, %arg7: memref<8x1xf32, #tpu.memory_space<vmem>>, %arg8: memref<8x256xf32, #tpu.memory_space<vmem>>, %arg9: memref<4x256xf32, #tpu.memory_space<vmem>>) attributes {dimension_semantics = [#tpu.dimension_semantics<parallel>], iteration_bounds = array<i64: 2>, scalar_prefetch = 0 : i64, scratch_operands = 1 : i64, tpu.core_type = #tpu.core_type<tc>, window_params = [{transform_indices = @transform_0, window_bounds = array<i64: 8, 256>}, {pipeline_mode = #tpu.pipeline_mode<synchronous>, transform_indices = @transform_1, window_bounds = array<i64: 12, 8>}, {pipeline_mode = #tpu.pipeline_mode<synchronous>, transform_indices = @transform_2, window_bounds = array<i64: 12, 1>}, {pipeline_mode = #tpu.pipeline_mode<synchronous>, transform_indices = @transform_3, window_bounds = array<i64: 4, 4>}, {pipeline_mode = #tpu.pipeline_mode<synchronous>, transform_indices = @transform_4, window_bounds = array<i64: 4, 1>}, {pipeline_mode = #tpu.pipeline_mode<synchronous>, transform_indices = @transform_5, window_bounds = array<i64: 8, 4>}, {pipeline_mode = #tpu.pipeline_mode<synchronous>, transform_indices = @transform_6, window_bounds = array<i64: 8, 1>}, {transform_indices = @transform_7, window_bounds = array<i64: 8, 256>}]} {
    %c0 = arith.constant 0 : index
    %c0_0 = arith.constant 0 : index
    %0 = vector.load %arg1[%c0, %c0_0] : memref<8x256xf32, #tpu.memory_space<vmem>>, vector<8x256xf32>
    %c0_1 = arith.constant 0 : index
    %c0_2 = arith.constant 0 : index
    %1 = vector.load %arg2[%c0_1, %c0_2] : memref<12x8xf32, #tpu.memory_space<vmem>>, vector<12x8xf32>
    %cst = arith.constant dense<0.000000e+00> : vector<12x256xf32>
    %2 = tpu.matmul %1, %0, %cst {dimension_numbers = #tpu.dot_dimension_numbers<[1], [0], [0], [1], [0, 0, 1, 1], [], []>} : vector<12x8xf32>, vector<8x256xf32>, vector<12x256xf32> -> vector<12x256xf32>
    %c0_3 = arith.constant 0 : index
    %c0_4 = arith.constant 0 : index
    %3 = vector.load %arg3[%c0_3, %c0_4] : memref<12x1xf32, #tpu.memory_space<vmem>>, vector<12x1xf32>
    %4 = vector.broadcast %3 : vector<12x1xf32> to vector<12x256xf32>
    %5 = arith.addf %2, %4 : vector<12x256xf32>
    %6 = vector.extract_strided_slice %5 {offsets = [0, 0], sizes = [4, 256], strides = [1, 1]} : vector<12x256xf32> to vector<4x256xf32>
    %7 = vector.extract_strided_slice %5 {offsets = [4, 0], sizes = [4, 256], strides = [1, 1]} : vector<12x256xf32> to vector<4x256xf32>
    %8 = vector.extract_strided_slice %5 {offsets = [8, 0], sizes = [4, 256], strides = [1, 1]} : vector<12x256xf32> to vector<4x256xf32>
    %cst_5 = arith.constant dense<0.000000e+00> : vector<4x4xf32>
    %9 = tpu.matmul %7, %8, %cst_5 {dimension_numbers = #tpu.dot_dimension_numbers<[1], [1], [0], [0], [0, 0, 1, 0], [], []>} : vector<4x256xf32>, vector<4x256xf32>, vector<4x4xf32> -> vector<4x4xf32>
    %cst_6 = arith.constant dense<0xFF800000> : vector<4xf32>
    %10 = vector.multi_reduction <maximumf>, %9, %cst_6 [0] : vector<4x4xf32> to vector<4xf32>
    %11 = vector.shape_cast %10 : vector<4xf32> to vector<1x4xf32>
    %12 = vector.broadcast %11 : vector<1x4xf32> to vector<4x4xf32>
    %13 = arith.subf %9, %12 : vector<4x4xf32>
    %14 = math.exp %13 : vector<4x4xf32>
    %cst_7 = arith.constant dense<0.000000e+00> : vector<4xf32>
    %15 = vector.multi_reduction <add>, %14, %cst_7 [0] : vector<4x4xf32> to vector<4xf32>
    %16 = vector.shape_cast %15 : vector<4xf32> to vector<1x4xf32>
    %17 = vector.broadcast %16 : vector<1x4xf32> to vector<4x4xf32>
    %18 = arith.divf %14, %17 : vector<4x4xf32>
    %cst_8 = arith.constant dense<0.000000e+00> : vector<4x256xf32>
    %19 = tpu.matmul %18, %6, %cst_8 {dimension_numbers = #tpu.dot_dimension_numbers<[1], [0], [0], [1], [0, 0, 1, 1], [], []>} : vector<4x4xf32>, vector<4x256xf32>, vector<4x256xf32> -> vector<4x256xf32>
    %c0_9 = arith.constant 0 : index
    %c0_10 = arith.constant 0 : index
    %20 = vector.load %arg9[%c0_9, %c0_10] : memref<4x256xf32, #tpu.memory_space<vmem>>, vector<4x256xf32>
    tpu.vector_store %arg9[%c0_9, %c0_10], %19 {strides = array<i32>} : memref<4x256xf32, #tpu.memory_space<vmem>>, vector<4x256xf32>,
    %c0_11 = arith.constant 0 : index
    %c0_12 = arith.constant 0 : index
    %21 = vector.load %arg4[%c0_11, %c0_12] : memref<4x4xf32, #tpu.memory_space<vmem>>, vector<4x4xf32>
    %c0_13 = arith.constant 0 : index
    %c0_14 = arith.constant 0 : index
    %22 = vector.load %arg9[%c0_13, %c0_14] : memref<4x256xf32, #tpu.memory_space<vmem>>, vector<4x256xf32>
    %cst_15 = arith.constant dense<0.000000e+00> : vector<4x256xf32>
    %23 = tpu.matmul %21, %22, %cst_15 {dimension_numbers = #tpu.dot_dimension_numbers<[1], [0], [0], [1], [0, 0, 1, 1], [], []>} : vector<4x4xf32>, vector<4x256xf32>, vector<4x256xf32> -> vector<4x256xf32>
    %c0_16 = arith.constant 0 : index
    %c0_17 = arith.constant 0 : index
    %24 = vector.load %arg5[%c0_16, %c0_17] : memref<4x1xf32, #tpu.memory_space<vmem>>, vector<4x1xf32>
    %25 = vector.broadcast %24 : vector<4x1xf32> to vector<4x256xf32>
    %26 = arith.addf %23, %25 : vector<4x256xf32>
    %c0_18 = arith.constant 0 : index
    %c0_19 = arith.constant 0 : index
    %27 = vector.load %arg6[%c0_18, %c0_19] : memref<8x4xf32, #tpu.memory_space<vmem>>, vector<8x4xf32>
    %cst_20 = arith.constant dense<0.000000e+00> : vector<8x256xf32>
    %28 = tpu.matmul %27, %26, %cst_20 {dimension_numbers = #tpu.dot_dimension_numbers<[1], [0], [0], [1], [0, 0, 1, 1], [], []>} : vector<8x4xf32>, vector<4x256xf32>, vector<8x256xf32> -> vector<8x256xf32>
    %c0_21 = arith.constant 0 : index
    %c0_22 = arith.constant 0 : index
    %29 = vector.load %arg7[%c0_21, %c0_22] : memref<8x1xf32, #tpu.memory_space<vmem>>, vector<8x1xf32>
    %30 = vector.broadcast %29 : vector<8x1xf32> to vector<8x256xf32>
    %31 = arith.addf %28, %30 : vector<8x256xf32>
    %32 = arith.addf %31, %0 : vector<8x256xf32>
    %cst_23 = arith.constant 0.000000e+00 : f32
    %33 = vector.broadcast %cst_23 : f32 to vector<8x256xf32>
    %34 = arith.maximumf %32, %33 : vector<8x256xf32>
    %c0_24 = arith.constant 0 : index
    %c0_25 = arith.constant 0 : index
    %35 = vector.load %arg8[%c0_24, %c0_25] : memref<8x256xf32, #tpu.memory_space<vmem>>, vector<8x256xf32>
    tpu.vector_store %arg8[%c0_24, %c0_25], %34 {strides = array<i32>} : memref<8x256xf32, #tpu.memory_space<vmem>>, vector<8x256xf32>,
    return
  }
  func.func @transform_0(%arg0: i32) -> (i32, i32) {
    %c0_i32 = arith.constant 0 : i32
    %c0_i32_0 = arith.constant 0 : i32
    return %c0_i32, %arg0 : i32, i32
  }
  func.func @transform_1(%arg0: i32) -> (i32, i32) {
    %c0_i32 = arith.constant 0 : i32
    %c0_i32_0 = arith.constant 0 : i32
    %c0_i32_1 = arith.constant 0 : i32
    return %c0_i32, %c0_i32_0 : i32, i32
  }
  func.func @transform_2(%arg0: i32) -> (i32, i32) {
    %c0_i32 = arith.constant 0 : i32
    %c0_i32_0 = arith.constant 0 : i32
    %c0_i32_1 = arith.constant 0 : i32
    return %c0_i32, %c0_i32_0 : i32, i32
  }
  func.func @transform_3(%arg0: i32) -> (i32, i32) {
    %c0_i32 = arith.constant 0 : i32
    %c0_i32_0 = arith.constant 0 : i32
    %c0_i32_1 = arith.constant 0 : i32
    return %c0_i32, %c0_i32_0 : i32, i32
  }
  func.func @transform_4(%arg0: i32) -> (i32, i32) {
    %c0_i32 = arith.constant 0 : i32
    %c0_i32_0 = arith.constant 0 : i32
    %c0_i32_1 = arith.constant 0 : i32
    return %c0_i32, %c0_i32_0 : i32, i32
  }
  func.func @transform_5(%arg0: i32) -> (i32, i32) {
    %c0_i32 = arith.constant 0 : i32
    %c0_i32_0 = arith.constant 0 : i32
    %c0_i32_1 = arith.constant 0 : i32
    return %c0_i32, %c0_i32_0 : i32, i32
  }
  func.func @transform_6(%arg0: i32) -> (i32, i32) {
    %c0_i32 = arith.constant 0 : i32
    %c0_i32_0 = arith.constant 0 : i32
    %c0_i32_1 = arith.constant 0 : i32
    return %c0_i32, %c0_i32_0 : i32, i32
  }
  func.func @transform_7(%arg0: i32) -> (i32, i32) {
    %c0_i32 = arith.constant 0 : i32
    %c0_i32_0 = arith.constant 0 : i32
    return %c0_i32, %arg0 : i32, i32
  }
}

</mosaic_0001>

<bundles_post_ra>
// kernel: tpu_custom_call.1
= control target key start
LH: loop header
LB: loop body
LE: loop exit
PB: predicated region body
PF: predicated region fallthrough
CT: control target
= control target key end

     0   :  { %12 = vsyncpa [#allocation4], 0  ;;  %s1140_s0 = inlined_call_operand.vmem [shape: f32[8,512], index: 0, kind: input, shape index: {}]   ;;  %s1141_s1 = inlined_call_operand.vmem [shape: f32[12,8], index: 1, kind: input, shape index: {}]   ;;  %s1142_s2 = inlined_call_operand.vmem [shape: f32[12,1], index: 2, kind: input, shape index: {}]   ;;  %s1143_s3 = inlined_call_operand.vmem [shape: f32[4,4], index: 3, kind: input, shape index: {}]   ;;  %s1144_s4 = inlined_call_operand.vmem [shape: f32[4,1], index: 4, kind: input, shape index: {}]   ;;  %s1145_s5 = inlined_call_operand.vmem [shape: f32[8,4], index: 5, kind: input, shape index: {}]   ;;  %s1146_s6 = inlined_call_operand.vmem [shape: f32[8,1], index: 6, kind: input, shape index: {}]   ;;  %s1147_s7 = inlined_call_operand.hbm [shape: f32[8,512], index: 7, kind: output, shape index: {}]  }
   0x1   :  { %14 = vsyncpa [#allocation4 + $0x1], 0  ;;  %s995_s24 = smov 0   ;;  %s997_s25 = smov 0  }
   0x2   :  { %s999_s26 = smov 0   ;;  %s1001_s27 = smov 0  }
   0x3 LB: > { %s1016_s28 = sadd.s32 4294967295, %s950_s27   ;;  %s816_s29 = sadd.s32 4294967294, %s950_s27   ;;  %s950_s27 = sphi %s1001_s27, %s1153_s27   ;;  %s946_s26 = sphi %s999_s26, %s1152_s26   ;;  %s942_s25 = sphi %s997_s25, %s1151_s25   ;;  %s938_s24 = sphi %s995_s24, %s1150_s24  }
   0x4   : > { %s1020_s30 = sadd.s32 1, %s950_s27   ;;  %s179_s8 = sadd.s32 1, %s946_s26 }
   0x5   : > { %s176_s9 = ssub.s32 %s950_s27, %s1020_s30  ;;  %p189_p0 = scmp.ne.s32.totalorder %s946_s26, %s942_s25 }
   0x6   : > { %p177_p1 = scmp.eq.s32.totalorder %s176_s9, 0  ;;  %p190_p2 = scmp.eq.s32.totalorder %s1016_s28, 1 }
   0x7   : > { %p195_p3 = scmp.ne.s32.totalorder %s942_s25, %s938_s24  ;;  %p196_p4 = scmp.eq.s32.totalorder %s816_s29, 1 }
   0x8   : > { %s1031_s10 = scalar_select %p177_p1, %s946_s26, %s179_s8  }
   0x9   : > { %p1033_p5 = por %p190_p2, %p189_p0  ;;  %p1037_p6 = por %p196_p4, %p195_p3 }
   0xa   : > { %p819_p7 = scmp.ge.s32.totalorder %s950_s27, 1  ;;  %p241_p8 = scmp.lt.s32.totalorder %s950_s27, 3 }
   0xc   : > { %p242_p9 = pnand %p819_p7, %p241_p8 }
   0xd   : > { %s821_s13 = sshll.u32 (!%p242_p9), %s1016_s28, 1  ;;  %v952_v0 = vmov (!%p242_p9), 0.0   ;;  %v285_v1 = vld [vmem:[%s1142_s2 + $0x8] sm:$0xf] (!%p242_p9)  ;;  %v953_v2 = vmov (!%p242_p9), 0   ;;  %v284_v3 = vld [vmem:[%s1142_s2] sm:$0xff] (!%p242_p9) }
   0xe   : > { %245 = sbr.rel (%p242_p9) target bundleno = 1183 (0x49f), region = 48  ;;  %p274_p10 = scmp.lt.s32.totalorder (!%p242_p9), %s821_s13, 3  ;;  %367 = vmatprep.mubr.f32.mxu0 (!%p242_p9), %v952_v0  ;;  %882 = vset.pattern.permute.xlu0 (!%p242_p9), %v953_v2  ;;  %v282_v6 = vld [vmem:[%s1141_s1] sm:$0xff] (!%p242_p9)  ;;  %vm296_vm0 = vcmask (!%p242_p9), 64512   ;;  %v283_v7 = vld [vmem:[%s1141_s1 + $0x8] sm:$0xf] (!%p242_p9) }
   0xf   : > { %883 = vset.pattern.permute.xlu1 (!%p242_p9), %v953_v2  ;;  %293 = vperm.xlu0 (!%p242_p9), %882, %v285_v1   ;;  %vm480_vm1 = vcmask (!%p242_p9), 1043456   ;;  %vm456_vm2 = vcmask (!%p242_p9), 27648   ;;  %vm476_vm3 = vcmask (!%p242_p9), 31744   ;;  %v563_v41 = vld [vmem:[%s1144_s4] sm:$0xf] (!%p242_p9)  ;;  %s270_s20 = sand.u32 (!%p242_p9), 1, %s942_s25  }
  0x10   : > { %566 = vperm.xlu1 (!%p242_p9), %883, %v563_v41   ;;  %v650_v42 = vld [vmem:[%s1146_s6] sm:$0xff] (!%p242_p9)  ;;  %s839_s22 = sshll.u32 (!%p242_p9), %s1016_s28, 8  ;;  %s743_s14 = scalar_lea.sflag (!%p242_p9), [#allocation4], %s270_s20 }
  0x11   : > { %v561_v47 = vld [vmem:[%s1143_s3] sm:$0xf] (!%p242_p9)  ;;  %s954_s15 = smov (!%p242_p9), [#allocation3]  }
  0x12   : > { %v649_v53 = vld [vmem:[%s1145_s5] sm:$0xff] (!%p242_p9)  ;;  %s892_s16 = sshll.u32 (!%p242_p9), %s954_s15, 4  ;;  %s893_s16 = int_to_ptr.vmem [resolvable:$false] %s892_s16 }
  0x13   : > { %288 = vperm.xlu0 (!%p242_p9), %882, %v284_v3   ;;  %s894_s17 = scalar_lea.vmem (!%p242_p9), %s893_s16, 512 }
  0x14   : > { %653 = vperm.xlu1 (!%p242_p9), %883, %v650_v42  }
  0x15   : > { %s1155_s13 = smov (!%p274_p10, %s821_s13), 3 }
  0x16   : > { %s822_s18 = sshll.u32 %s1155_s13, 3  ;;  %s1098_s13 = scalar_lea.hbm %s1147_s7, %s839_s22 }
  0x17   : > { %s277_s21 = scalar_lea.vmem %s1140_s0, %s822_s18 }
  0x18   : > { %v1054_v4 = vld [vmem:[%s277_s21 + $0x8] sm:$0xff]  ;;  %v1056_v5 = vld [vmem:[%s277_s21] sm:$0xff]  ;;  %s820_s21 = sshll.u32 %s270_s20, 4 }
  0x19   : > { %303 = vmatprep.subr.mxu0 %v1054_v4  ;;  %s272_s23 = scalar_lea.vmem [#allocation3], %s820_s21 }
  0x1a   : > { %304 = vmatpush1.msra.mxu0 %v1056_v5  ;;  %s757_s29 = sshll.u32 %s272_s23, 4  ;;  %s1100_s29 = int_to_ptr.vmem [resolvable:$true] %s757_s29 }
  0x1b   : > { %823 = vmatmul.mubr.msk.f32.vlgmr.msra.gmra.mrb[0].mxu0 %vm296_vm0, %v282_v6  ;;  %s888_s28 = scalar_lea.vmem %s1100_s29, 256  ;;  %p895_p0 = scmp.lt.s32.totalorder %s1100_s29, %s893_s16 }
  0x1c   : > { %373 = vmatprep.mubr.f32.mxu0 %v952_v0  ;;  %p889_p11 = scmp.ne.s32.totalorder %s1100_s29, %s888_s28  ;;  %p896_p1 = scmp.lt.s32.totalorder %s894_s17, %s888_s28 }
  0x1e   : > { %p890_p12 = pnand %p889_p11, %p1033_p5  ;;  %p897_p2 = por %p896_p1, %p895_p0 }
  0x1f   : > { %824 = vmatmul.mubr.msk.f32.gmra.mrb[2].mxu0 %vm296_vm0, %v283_v7 }
  0x20   : > { %642 = vmatprep.mubr.f32.mxu0 %v952_v0  ;;  %p891_p13 = pneg %p890_p12 }
  0x22   : > { %p898_p3 = pnand %p897_p2, %p891_p13 }
  0x8e   : > { %v294_v8 = vpop.permute.xlu0 %293 }
  0x8f   : > { %v567_v49 = vpop.permute.xlu1 %566 }
  0x92   : > { %v289_v9 = vpop.permute.xlu0 %288 }
  0x93   : > { %v654_v54 = vpop.permute.xlu1 %653 }
  0xee   : > { %v369_v10 = vpop.f32.mrb[0].mxu0 }
  0xef   : > { %v371_v11 = vpop.f32.mrb[1].mxu0  ;;  %v370_v16 = vadd.f32 %v369_v10, %v289_v9 }
  0xf0   : > { %v372_v12 = vadd.f32 %v371_v11, %v289_v9 }
  0xf1   : > { %v382_v19 = vrot.slane %v370_v16, 4 }
  0xf2   : > { %v375_v13 = vpop.f32.mrb[2].mxu0  ;;  %v383_v14 = vrot.slane %v372_v12, 4 }
  0xf3   : > { %v377_v15 = vpop.f32.mrb[3].mxu0  ;;  %v376_v18 = vadd.f32 %v375_v13, %v294_v8 }
  0xf4   : > { %450 = vmatprep.mubr.f32.mxu1 %v383_v14  ;;  %v378_v17 = vadd.f32 %v377_v15, %v294_v8 }
  0xf6   : > { %386 = vmatprep.subr.mxu1 %v378_v17 }
  0xf7   : > { %387 = vmatpush1.xpose.msra.mxu1 %v376_v18 }
  0xf8   : > { %825 = vmatprep.subr.msk.mxu1 %vm480_vm1, %v372_v12 }
  0xfa   : > { %451 = vmatmul.mubr.f32.vlgmr.msra.gmra.mrb[0].mxu1 %v382_v19 }
  0xfb   : > { %826 = vmatpush1.msk.msra.mxu1 %vm480_vm1, %v370_v16  ;;  %549 = vmatprep.mubr.f32.mxu1 %v952_v0 }
 0x1cd   : > { %v452_v20 = vpop.f32.mrb[0].mxu1 }
 0x1ce   : > { %v457_v21 = vsel %vm456_vm2, %v452_v20, -inf  ;;  %v454_v22 = vpop.f32.mrb[1].mxu1 }
 0x1cf   : > { %v458_v23 = vrot.slane %v457_v21, 4 }
 0x1d1   : > { %v459_v24 = vmax.f32 %v457_v21, %v458_v23 }
 0x1d3   : > { %v460_v25 = vrot.slane %v459_v24, 2 }
 0x1d5   : > { %v461_v26 = vmax.f32 %v459_v24, %v460_v25 }
 0x1d7   : > { %v462_v27 = vrot.slane %v461_v26, 1 }
 0x1d9   : > { %v463_v28 = vmax.f32 %v461_v26, %v462_v27 }
 0x1db   : > { %v464_v29 = vsub.f32 %v452_v20, %v463_v28 }
 0x1dd   : > { %v465_v30 = vmul.f32 1.442695, %v464_v29 }
 0x1df   : > { %884 = vpow2.f32 %v465_v30 }
 0x1e9   : > { %v885_v31 = vpop.eup %884 }
 0x1ea   : > { %v467_v32 = vsel %vm456_vm2, %v885_v31, 0.0 }
 0x1eb   : > { %v468_v33 = vrot.slane %v467_v32, 4 }
 0x1ed   : > { %v469_v34 = vadd.f32 %v468_v33, %v467_v32 }
 0x1ef   : > { %v470_v35 = vrot.slane %v469_v34, 2 }
 0x1f1   : > { %v471_v36 = vadd.f32 %v470_v35, %v469_v34 }
 0x1f3   : > { %v472_v37 = vrot.slane %v471_v36, 1 }
 0x1f5   : > { %v473_v38 = vadd.f32 %v472_v37, %v471_v36 }
 0x1f7   : > { %886 = vrcp.f32 %v473_v38 }
 0x201   : > { %v887_v39 = vpop.eup %886 }
 0x202   : > { %v475_v40 = vmul.f32 %v887_v39, %v885_v31 }
 0x204   : > { %827 = vmatmul.mubr.msk.f32.vlgmr.msra.gmra.mrb[2].mxu1 %vm476_vm3, %v475_v40 }
 0x205   : > { %729 = vmatprep.mubr.f32.mxu1 %v952_v0 }
 0x2d7   : > { %v551_v43 = vpop.f32.mrb[2].mxu1 }
 0x2d8   : > { %v553_v44 = vpop.f32.mrb[3].mxu1 }
 0x2d9   : > { %v558_v45 = vcombine.low %v551_v43, %v553_v44  ;;  %v840_v46 = vcombine.low %v553_v44, %v553_v44 }
 0x2db   : > { %828 = vmatprep.subr.msk.mxu0 %vm480_vm1, %v840_v46 }
 0x2dc   : > { %829 = vmatpush1.msk.msra.mxu0 %vm480_vm1, %v558_v45 }
 0x2dd   : > { %830 = vmatmul.mubr.msk.f32.vlgmr.msra.gmra.mrb[4].mxu0 %vm476_vm3, %v561_v47 }
 0x3b0   : > { %v644_v48 = vpop.f32.mrb[4].mxu0 }
 0x3b1   : > { %v646_v50 = vpop.f32.mrb[5].mxu0  ;;  %v645_v52 = vadd.f32 %v644_v48, %v567_v49 }
 0x3b2   : > { %v647_v51 = vadd.f32 %v646_v50, %v567_v49 }
 0x3b4   : > { %831 = vmatprep.subr.msk.mxu1 %vm480_vm1, %v647_v51 }
 0x3b5   : > { %832 = vmatpush1.msk.msra.mxu1 %vm480_vm1, %v645_v52 }
 0x3b6   : > { %833 = vmatmul.mubr.msk.f32.vlgmr.msra.gmra.mrb[4].mxu1 %vm476_vm3, %v649_v53 }
 0x489   : > { %v731_v55 = vpop.f32.mrb[4].mxu1 }
 0x48a   : > { %v732_v56 = vadd.f32 %v731_v55, %v654_v54  ;;  %v733_v57 = vpop.f32.mrb[5].mxu1 }
 0x48b   : > { %v734_v58 = vadd.f32 %v733_v57, %v654_v54 }
 0x48c   : > { %v736_v59 = vadd.f32 %v732_v56, %v1056_v5 }
 0x48d   : > { %v737_v60 = vadd.f32 %v734_v58, %v1054_v4 }
 0x48e   : > { %v738_v61 = vmax.f32 %v736_v59, 0.0 }
 0x48f   : > { %v739_v62 = vmax.f32 %v737_v60, 0.0 }
 0x490   : > { %740 = vst [vmem:[%s272_s23] sm:$0xff] %v738_v61 }
 0x491   : > { %741 = vst [vmem:[%s272_s23 + $0x8] sm:$0xff] %v739_v62 }
 0x492   : > { %901 = shalt.err (!%p898_p3)
}
 0x493   : > { %s902_s18 = scalar_lea.hbm %s1098_s13, 256  ;;  %s906_s21 = scalar_lea.hbm %s1147_s7, 512 }
 0x494   : > { %p903_p4 = scmp.ne.s32.totalorder %s1098_s13, %s902_s18  ;;  %p907_p9 = scmp.lt.u32.totalorder %s1098_s13, %s1147_s7 }
 0x495   : > { %p908_p10 = scmp.lt.u32.totalorder %s906_s21, %s902_s18  ;;  %p910_p12 = scmp.lt.u32.totalorder %s902_s18, %s1098_s13 }
 0x496   : > { %p904_p7 = pnand %p903_p4, %p1033_p5 }
 0x497   : > { %p909_p11 = por %p908_p10, %p907_p9 }
 0x498   : > { %p905_p8 = pneg %p904_p7 }
 0x499   : > { %p911_p13 = por %p910_p12, %p909_p11 }
 0x49b   : > { %p912_p0 = pnand %p911_p13, %p905_p8 }
 0x49d   : > { %915 = shalt.err (!%p912_p0)
}
 0x49e   : > { %841 = dma.vmem_to_hbm [thread:$0]  (%p1033_p5), %s1100_s29, 256, %s1098_s13, %s743_s14  }
 0x49f PF: > { %p847_p1 = scmp.ge.s32.totalorder %s950_s27, 2  ;;  %s769_s8 = sand.u32 1, %s938_s24  }
 0x4a0   : > { %s770_s9 = scalar_lea.sflag [#allocation4], %s769_s8 }
 0x4a1   : > { %p844_p2 = pnand %p847_p1, %p1037_p6 }
 0x4a3   : > { %933 = dma.done.wait (!%p844_p2), %s770_s9, 256  }
 0x4a4   : > { %935 = vsyncadd (!%p844_p2), %s770_s9, 4294967040  ;;  %p17_p3 = scmp.ge.s32.totalorder %s1020_s30, 4   ;;  %s1150_s24 = smov %s942_s25 }
 0x4a5   : > { %s1151_s25 = smov %s946_s26  ;;  %s1152_s26 = smov %s1031_s10 }
 0x4a6   : > { %s1153_s27 = smov %s1020_s30  ;;  %19 = sbr.rel (!%p17_p3) target bundleno = 3 (0x3), region = 83 }
 0x4ad   :  { %775 = vsyncpa [#allocation4], 1 }
 0x4ae   :  { %777 = vsyncpa [#allocation4 + $0x1], 1 }

</bundles_post_ra>
